<compile_context>
chip_gen: v7x
topology: tpu7x:2x2x1
jax: 0.10.0
libtpu: 0.0.40
codegen_flags: <defaults>
</compile_context>

<pallas_src>
import math
import functools

import numpy as np
import jax
import jax.numpy as jnp
from jax.experimental import pallas as pl
from jax.experimental.pallas import tpu as pltpu


# ----------------------------- filters / buffers -----------------------------

def _gaussian_1d(kernel_size=3, sigma=1.0):
    g = [math.exp(-((i - kernel_size // 2) ** 2) / (2.0 * sigma * sigma))
         for i in range(kernel_size)]
    s = sum(g)
    return [v / s for v in g]


def _gaussian_3x3(sigma=1.0):
    g = _gaussian_1d(3, sigma)
    return [[g[i] * g[j] for j in range(3)] for i in range(3)]


_LAPLACIAN_3x3 = [[0.0, 1.0, 0.0], [1.0, -4.0, 1.0], [0.0, 1.0, 0.0]]


def _get_freq_indices_top16():
    all_top_x = [0, 0, 6, 0, 0, 1, 1, 4, 5, 1, 3, 0, 0, 0, 3, 2,
                 4, 6, 3, 5, 5, 2, 6, 5, 5, 3, 3, 4, 2, 2, 6, 1]
    all_top_y = [0, 1, 0, 5, 2, 0, 2, 0, 0, 6, 0, 4, 6, 3, 5, 2,
                 6, 3, 3, 3, 5, 1, 1, 2, 4, 2, 1, 1, 3, 0, 5, 3]
    return all_top_x[:16], all_top_y[:16]


def _build_dct_filter(H, W, C):
    mx, my = _get_freq_indices_top16()
    mx = [v * (H // 7) for v in mx]
    my = [v * (W // 7) for v in my]
    num_freq = len(mx)
    assert C % num_freq == 0
    c_part = C // num_freq

    def bf(pos, freq, POS):
        r = math.cos(math.pi * freq * (pos + 0.5) / POS) / math.sqrt(POS)
        return r if freq == 0 else r * math.sqrt(2)

    filt = np.zeros((C, H, W), dtype=np.float32)
    for i, (ux, vy) in enumerate(zip(mx, my)):
        for tx in range(H):
            for ty in range(W):
                filt[i * c_part:(i + 1) * c_part, tx, ty] = bf(tx, ux, H) * bf(ty, vy, W)
    return jnp.asarray(filt)


# --------------------- roll sign-convention (one-time probe) -----------------

@functools.lru_cache(maxsize=None)
def _roll_matches_numpy():
    """True iff pltpu.roll(x, s)[i] == x[(i - s) % n] (jnp.roll semantics)."""
    def k(x_ref, o_ref):
        o_ref[...] = pltpu.roll(x_ref[...], 1, axis=1)

    x = jnp.tile(jnp.arange(128, dtype=jnp.float32)[None, :], (8, 1))
    y = pl.pallas_call(k, out_shape=jax.ShapeDtypeStruct((8, 128), jnp.float32))(x)
    return bool(jax.device_get(y)[0, 0] == 127.0)


# --------------------------------- kernel ------------------------------------

def _make_lhfa_kernel(TB, C, H, W, g0, g1, roll_np):
    HW = H * W
    inv_hw = 1.0 / float(HW)

    def shift(v, d, mask):
        # y[..., i] = v[..., i + d] inside the valid window, 0 outside.
        amt = ((-d) if roll_np else d) % HW
        return jnp.where(mask, pltpu.roll(v, amt, axis=1), 0.0)

    def kernel(x_ref, w1dct_ref, w2t_ref, out_ref):
        x = x_ref[...]                                # (TB, C, HW) f32
        w1dct = w1dct_ref[...]                        # (Cr, HW) = W1 @ dct_filter
        w2t = w2t_ref[...]                            # (Cr, C)  = W2.T

        # Boundary masks on the flattened (h*W + w) spatial axis.
        col = jax.lax.broadcasted_iota(jnp.int32, (TB, HW), 1)
        w_id = col % W
        m_e = w_id < (W - 1)                          # (w + 1) in bounds
        m_w = w_id > 0                                # (w - 1) in bounds
        m_s = col < (HW - W)                          # (h + 1) in bounds
        m_n = col >= W                                # (h - 1) in bounds

        # Gaussian low-pass.  Both filters expand one 3x3 kernel to a dense
        # (C, C, 3, 3) conv, so every output channel equals the conv of the
        # channel sum -> collapse channels, then a separable 3-tap pass along
        # w followed by one along h (zero 'same' padding via the masks).
        xs = jnp.sum(x, axis=1)                                          # (TB, HW)
        t = g1 * xs + g0 * (shift(xs, 1, m_e) + shift(xs, -1, m_w))
        lp = g1 * t + g0 * (shift(t, W, m_s) + shift(t, -W, m_n))        # (TB, HW)

        # FcaNet channel attention + GAP + channel softmax, per sample.
        # (DCT spatial reduction fused with the first linear layer.)
        rows = []
        for b in range(TB):
            lp_b = lp[b:b + 1, :]                                        # (1, HW)
            hmid = jnp.maximum(
                jnp.sum(w1dct * lp_b, axis=1, keepdims=True), 0.0)       # (Cr, 1)
            s_row = jax.nn.sigmoid(
                jnp.sum(w2t * hmid, axis=0, keepdims=True))              # (1, C)
            lp_mean = jnp.sum(lp_b, axis=1, keepdims=True) * inv_hw      # (1, 1)
            g = s_row * lp_mean                                          # (1, C)
            e = jnp.exp(g - jnp.max(g, axis=1, keepdims=True))
            a = e / jnp.sum(e, axis=1, keepdims=True)                    # softmax_C
            # The Laplacian conv also collapses channels; with identical
            # low-pass channels that collapse is lp * sum_c(a)  (~= 1).
            rows.append(lp_b * jnp.sum(a, axis=1, keepdims=True))
        hi = rows[0] if TB == 1 else jnp.concatenate(rows, axis=0)       # (TB, HW)

        # Laplacian high-pass (cross kernel), zero 'same' padding.
        hp = (-4.0) * hi + (shift(hi, 1, m_e) + shift(hi, -1, m_w)
                            + shift(hi, W, m_s) + shift(hi, -W, m_n))

        # Residual.
        out_ref[...] = x + hp[:, None, :]

    return kernel


# --------------------------------- wrapper -----------------------------------

def _pick_batch_block(N, per_sample_bytes, target_bytes=512 * 1024, max_tb=8):
    tb = 1
    for cand in range(1, min(N, max_tb) + 1):
        if N % cand:
            continue
        if N >= 2 and (N // cand) < 2:
            continue  # keep >= 2 grid steps so both v7x TensorCores get work
        if cand * per_sample_bytes <= target_bytes:
            tb = cand
    return tb


def lhfa_forward(x, dct_w, w1, w2):
    """x: (N, C, H, W) f32; dct_w: (C, H, W); w1: (C//16, C); w2: (C, C//16)."""
    N, C, H, W = x.shape
    HW = H * W
    Cr = w1.shape[0]
    assert dct_w.shape == (C, H, W) and w1.shape == (Cr, C) and w2.shape == (C, Cr)

    g1d = _gaussian_1d()
    roll_np = _roll_matches_numpy()

    # Trace-time weight prep: fold the DCT filter into the first SE layer
    # ((Cr,C) @ (C,HW) -> (Cr,HW)) and put the long C axis of W2 on lanes.
    w1dct = jnp.matmul(w1, dct_w.reshape(C, HW),
                       precision=jax.lax.Precision.HIGHEST)              # (Cr, HW)
    w2t = jnp.transpose(w2)                                              # (Cr, C)

    x_flat = x.reshape(N, C, HW)          # lane-dense: H*W rides the lane axis
    TB = _pick_batch_block(N, C * HW * 4)

    kernel = _make_lhfa_kernel(TB, C, H, W, float(g1d[0]), float(g1d[1]), roll_np)
    out_flat = pl.pallas_call(
        kernel,
        out_shape=jax.ShapeDtypeStruct((N, C, HW), x.dtype),
        grid_spec=pltpu.PrefetchScalarGridSpec(
            num_scalar_prefetch=0,
            grid=(N // TB,),
            in_specs=[
                pl.BlockSpec((TB, C, HW), lambda n: (n, 0, 0)),
                pl.BlockSpec((Cr, HW), lambda n: (0, 0)),
                pl.BlockSpec((Cr, C), lambda n: (0, 0)),
            ],
            out_specs=pl.BlockSpec((TB, C, HW), lambda n: (n, 0, 0)),
        ),
        # NOTE: at production sizes (e.g. C=512, H=W=56) additionally pass
        # vmem_limit_bytes and/or split C over an extra grid axis (v7x: 64 MiB).
        compiler_params=pltpu.CompilerParams(dimension_semantics=("parallel",)),
    )(x_flat, w1dct, w2t)
    return out_flat.reshape(N, C, H, W)


# ------------------------- pure-JAX reference (check) ------------------------

def _lhfa_reference(x, dct_w, w1, w2):
    """Replica of the PyTorch LHFA forward using dense (C,C,3,3) convs."""
    N, C, H, W = x.shape
    gk = jnp.asarray(_gaussian_3x3(), jnp.float32)
    lap = jnp.asarray(_LAPLACIAN_3x3, jnp.float32)

    def conv(inp, k3):
        wgt = jnp.broadcast_to(k3[None, None, :, :], (C, C, 3, 3))
        return jax.lax.conv_general_dilated(
            inp, wgt, (1, 1), ((1, 1), (1, 1)),
            dimension_numbers=("NCHW", "OIHW", "NCHW"),
            precision=jax.lax.Precision.HIGHEST)

    low = conv(x, gk)                                             # GaussianFilter
    y = jnp.sum(low * dct_w[None], axis=(2, 3))                   # DCT layer
    h = jnp.maximum(jnp.matmul(y, w1.T, precision=jax.lax.Precision.HIGHEST), 0.0)
    s = jax.nn.sigmoid(jnp.matmul(h, w2.T, precision=jax.lax.Precision.HIGHEST))
    att = low * s[:, :, None, None]                               # attention output
    a = jax.nn.softmax(jnp.mean(att, axis=(2, 3)), axis=1)        # GAP + softmax
    high = conv(low * a[:, :, None, None], lap)                   # LaplacianFilter
    return high + x


# ----------------------------------- main ------------------------------------

if __name__ == "__main__":
    # C must be a multiple of 16 (top16 frequency set, reduction=16).
    N, C, H, W = 2, 16, 16, 16
    key = jax.random.PRNGKey(0)
    kx, k1, k2 = jax.random.split(key, 3)

    x = jax.random.normal(kx, (N, C, H, W), dtype=jnp.float32)
    Cr = C // 16
    b1 = 1.0 / math.sqrt(C)
    b2 = 1.0 / math.sqrt(Cr)
    w1 = jax.random.uniform(k1, (Cr, C), jnp.float32, -b1, b1)   # Linear(C, C//16).weight
    w2 = jax.random.uniform(k2, (C, Cr), jnp.float32, -b2, b2)   # Linear(C//16, C).weight
    dct_w = _build_dct_filter(H, W, C)                           # DCT buffer (C, H, W)

    out = jax.block_until_ready(lhfa_forward(x, dct_w, w1, w2))
    assert out.shape == (N, C, H, W) and out.dtype == jnp.float32

    ref = jax.block_until_ready(_lhfa_reference(x, dct_w, w1, w2))
    np.testing.assert_allclose(np.asarray(out), np.asarray(ref), rtol=2e-3, atol=2e-3)
    print("KERNEL_OK")
</pallas_src>

<mosaic_0001>
module attributes {stable_mosaic.version = 11 : i64} {
  func.func @k(%arg0: memref<8x128xf32, #tpu.memory_space<vmem>>, %arg1: memref<8x128xf32, #tpu.memory_space<vmem>>) attributes {dimension_semantics = [], scalar_prefetch = 0 : i64, scratch_operands = 0 : i64, tpu.core_type = #tpu.core_type<tc>} {
    %c0 = arith.constant 0 : index
    %c0_0 = arith.constant 0 : index
    %0 = vector.load %arg0[%c0, %c0_0] : memref<8x128xf32, #tpu.memory_space<vmem>>, vector<8x128xf32>
    %c1_i32 = arith.constant 1 : i32
    %1 = tpu.dynamic_rotate %0 by %c1_i32 dim 1 : vector<8x128xf32>, i32 -> vector<8x128xf32>
    %c0_1 = arith.constant 0 : index
    %c0_2 = arith.constant 0 : index
    %2 = vector.load %arg1[%c0_1, %c0_2] : memref<8x128xf32, #tpu.memory_space<vmem>>, vector<8x128xf32>
    tpu.vector_store %arg1[%c0_1, %c0_2], %1 {strides = array<i32>} : memref<8x128xf32, #tpu.memory_space<vmem>>, vector<8x128xf32>,
    return
  }
}

</mosaic_0001>

<bundles_post_ra>
// kernel: tpu_custom_call.1
= control target key start
LH: loop header
LB: loop body
LE: loop exit
PB: predicated region body
PF: predicated region fallthrough
CT: control target
= control target key end

     0   :  { %6 = vsyncpa [#allocation3], 0  ;;  %s128_s0 = inlined_call_operand.hbm [shape: f32[8,128], index: 0, kind: input, shape index: {}]   ;;  %s129_s1 = inlined_call_operand.hbm [shape: f32[8,128], index: 1, kind: output, shape index: {}]  }
   0x1   :  { %7 = vsyncpa [#allocation4], 0  ;;  %s91_s6 = smov [#allocation2]   ;;  %s43_s10 = scalar_lea.hbm %s128_s0, 128 }
   0x2   :  { %s14_s7 = sshll.u32 %s91_s6, 4  ;;  %p44_p0 = scmp.ne.s32.totalorder %s128_s0, %s43_s10  ;;  %s15_s7 = int_to_ptr.vmem [resolvable:$true] %s14_s7 }
   0x3   :  { %p47_p1 = scmp.lt.u32.totalorder %s43_s10, %s128_s0 }
   0x5   :  { %p49_p2 = pnand %p47_p1, %p44_p0 }
   0x7   :  { %52 = shalt.err (!%p49_p2)
}
   0x8   :  { %s53_s15 = scalar_lea.vmem %s15_s7, 128  ;;  %p58_p4 = scmp.lt.s32.totalorder %s15_s7, %s15_s7 }
   0x9   :  { %p54_p3 = scmp.ne.s32.totalorder %s15_s7, %s53_s15  ;;  %p59_p5 = scmp.lt.s32.totalorder %s53_s15, %s53_s15 }
   0xb   :  { %p60_p6 = por %p59_p5, %p58_p4 }
   0xd   :  { %p61_p7 = pnand %p60_p6, %p54_p3 }
   0xf   :  { %64 = shalt.err (!%p61_p7)
}
  0x10   :  { %17 = dma.hbm_to_vmem [thread:$0]  %s128_s0, 128, %s15_s7, [#allocation3]  }
  0x11   :  { %87 = dma.done.wait [#allocation3], 128  }
  0x12   :  { %88 = vsyncadd [#allocation3], 4294967168  ;;  %v21_v0 = vld [vmem:[#allocation2] sm:$0xff]  ;;  %s92_s18 = smov 1   ;;  %s93_s19 = smov [#allocation5]  }
  0x13   :  { %22 = vrot.lane.b32.xlu0 %v21_v0, %s92_s18  ;;  %s31_s20 = sshll.u32 %s93_s19, 4  ;;  %s32_s20 = int_to_ptr.vmem [resolvable:$true] %s31_s20 }
  0x14   :  { %s65_s21 = scalar_lea.vmem %s32_s20, 128  ;;  %p70_p9 = scmp.lt.s32.totalorder %s32_s20, %s32_s20 }
  0x15   :  { %p66_p8 = scmp.ne.s32.totalorder %s32_s20, %s65_s21  ;;  %p71_p10 = scmp.lt.s32.totalorder %s65_s21, %s65_s21 }
  0x17   :  { %p72_p11 = por %p71_p10, %p70_p9 }
  0x19   :  { %p73_p12 = pnand %p72_p11, %p66_p8 }
  0x85   :  { %v23_v1 = vpop.permute.xlu0 %22 }
  0x86   :  { %24 = vst [vmem:[#allocation5] sm:$0xff] %v23_v1 }
  0x87   :  { %76 = shalt.err (!%p73_p12)
}
  0x88   :  { %s77_s0 = scalar_lea.hbm %s129_s1, 128 }
  0x89   :  { %p78_p13 = scmp.ne.s32.totalorder %s129_s1, %s77_s0  ;;  %p81_p0 = scmp.lt.u32.totalorder %s77_s0, %s129_s1 }
  0x8b   :  { %p83_p1 = pnand %p81_p0, %p78_p13 }
  0x8d   :  { %86 = shalt.err (!%p83_p1)
}
  0x8e   :  { %34 = dma.vmem_to_hbm [thread:$0]  %s32_s20, 128, %s129_s1, [#allocation4]  }
  0x8f   :  { %89 = dma.done.wait [#allocation4], 128  }
  0x90   :  { %90 = vsyncadd [#allocation4], 4294967168 }
  0x91   :  { %38 = vsyncpa [#allocation3], 1 }
  0x92   :  { %39 = vsyncpa [#allocation4], 1 }

</bundles_post_ra>
